<compile_context>
chip_gen: v7x
topology: tpu7x:2x2x1
jax: 0.10.0
libtpu: 0.0.40
codegen_flags: <defaults>
</compile_context>

<pallas_src>
import functools

import jax
import jax.numpy as jnp
from jax.experimental import pallas as pl
from jax.experimental.pallas import tpu as pltpu

_MIB = 1024 * 1024


def _round_up(x, m):
    return ((x + m - 1) // m) * m


def _fused_mlp_kernel(*refs, num_layers, compute_dtype):
    # refs = (x_ref, w0_ref, b0_ref, w1_ref, b1_ref, ..., o_ref)
    # x_ref: (TM, D0p) f32; w_l: (Dl_p, D{l+1}_p) compute_dtype; b_l: (1, D{l+1}_p) f32
    x_ref = refs[0]
    o_ref = refs[-1]

    # Carry the activation in the MXU compute dtype (bf16); accumulate in f32.
    act = x_ref[...].astype(compute_dtype)
    for l in range(num_layers):
        w_ref = refs[1 + 2 * l]
        b_ref = refs[2 + 2 * l]
        y = jnp.dot(act, w_ref[...], preferred_element_type=jnp.float32)
        y = y + b_ref[...]  # f32 bias, broadcast over batch rows
        # Exact sigmoid via tanh: one EUP transcendental per element; the
        # mul/add ride in spare VALU slots.  No approx-reciprocal error.
        sig = 0.5 * jnp.tanh(0.5 * y) + 0.5
        if l + 1 < num_layers:
            act = sig.astype(compute_dtype)  # bf16 carry between layers
        else:
            o_ref[...] = sig.astype(o_ref.dtype)  # final layer stays f32


def prepare_mlp_params(params, compute_dtype=jnp.bfloat16):
    """One-time (outside the hot path) lane-dense zero-padding and bf16 cast.

    params: list of (w_t, b) with w_t: (in_features, out_features), b: (out,).
    Returns a dict consumed by mlp_forward.
    """
    dims = [params[0][0].shape[0]] + [w.shape[1] for (w, _) in params]
    pdims = [_round_up(d, 128) for d in dims]

    padded = []
    for l, (w, b) in enumerate(params):
        din_p, dout_p = pdims[l], pdims[l + 1]
        w_p = jnp.zeros((din_p, dout_p), compute_dtype)
        w_p = w_p.at[: w.shape[0], : w.shape[1]].set(w.astype(compute_dtype))
        b_p = jnp.zeros((1, dout_p), jnp.float32)
        b_p = b_p.at[0, : b.shape[0]].set(b.astype(jnp.float32))
        padded.append((w_p, b_p))

    return {
        "padded_params": padded,
        "dims": dims,
        "pdims": pdims,
        "compute_dtype": compute_dtype,
    }


def _choose_batch_tile(batch, batch_tile):
    if batch_tile is not None:
        return max(8, _round_up(batch_tile, 8))
    tm = min(_round_up(batch, 8), 512)  # per-step overhead amortized by 512-row tiles
    tm = max(8, _round_up(tm, 8))
    # Prefer >= 2 grid steps so v7x's two TensorCores both get work.
    if _round_up(batch, tm) // tm < 2:
        half = max(8, _round_up(tm // 2, 8))
        if half < tm and _round_up(batch, half) // half >= 2:
            tm = half
    return tm


def mlp_forward(x, prepared, *, batch_tile=None):
    """Fused MultiLayerPerceptron.forward: Linear -> sigmoid for every layer
    (hidActivationFn=sigmoid, outputActivationFn=sigmoid, dropout=None).

    x: (B, inputDim) float32; prepared: output of prepare_mlp_params().
    Returns (B, outputDim) float32.
    """
    dims = prepared["dims"]
    pdims = prepared["pdims"]
    padded_params = prepared["padded_params"]
    compute_dtype = prepared["compute_dtype"]

    B, in_dim = x.shape
    assert in_dim == dims[0], (in_dim, dims[0])
    num_layers = len(padded_params)
    out_dim = dims[-1]
    max_pd = max(pdims)

    tm = _choose_batch_tile(B, batch_tile)
    b_pad = _round_up(B, tm)
    grid = (b_pad // tm,)

    # Only the activation is padded per call (cheap); weights were padded once.
    x_p = jnp.zeros((b_pad, pdims[0]), jnp.float32)
    x_p = x_p.at[:B, :in_dim].set(x.astype(jnp.float32))

    kernel = functools.partial(
        _fused_mlp_kernel, num_layers=num_layers, compute_dtype=compute_dtype
    )

    weight_bytes = sum(
        w.size * w.dtype.itemsize + b.size * b.dtype.itemsize
        for (w, b) in padded_params
    )

    def _call(weight_pipeline_mode):
        in_specs = [pl.BlockSpec((tm, pdims[0]), lambda i: (i, 0))]
        flat_inputs = [x_p]
        for (w_p, b_p) in padded_params:
            if weight_pipeline_mode is None:
                in_specs.append(pl.BlockSpec(w_p.shape, lambda i: (0, 0)))
                in_specs.append(pl.BlockSpec(b_p.shape, lambda i: (0, 0)))
            else:
                in_specs.append(
                    pl.BlockSpec(w_p.shape, lambda i: (0, 0),
                                 pipeline_mode=weight_pipeline_mode))
                in_specs.append(
                    pl.BlockSpec(b_p.shape, lambda i: (0, 0),
                                 pipeline_mode=weight_pipeline_mode))
            flat_inputs.extend([w_p, b_p])

        out_specs = pl.BlockSpec((tm, pdims[-1]), lambda i: (i, 0))
        out_shape = jax.ShapeDtypeStruct((b_pad, pdims[-1]), jnp.float32)

        # --- VMEM budget (per generation) ---
        wfactor = 1 if weight_pipeline_mode is not None else 2
        act_bytes = (
            2 * tm * pdims[0]      # double-buffered input tile (f32)
            + 2 * tm * pdims[-1]   # double-buffered output tile (f32)
            + 3 * tm * max_pd      # widest live hidden intermediates (f32 acc + carries)
        ) * 4
        needed = wfactor * weight_bytes + act_bytes + 4 * _MIB  # Mosaic scratch headroom
        try:
            vmem_cap = int(pltpu.get_tpu_info().vmem_capacity_bytes)
        except Exception:
            vmem_cap = 64 * _MIB  # conservative (v7x-sized) assumption
        if vmem_cap >= 100 * _MIB:           # v5e / v6e: 128 MiB physical
            ceiling = 100 * _MIB
        else:                                # v7x: 64 MiB physical -> leave headroom
            ceiling = (vmem_cap * 13) // 16  # ~52 MiB
        vmem_limit = int(min(ceiling, max(16 * _MIB, needed)))

        # Advisory cost estimate (weights fetched once; invariant blocks are
        # not re-DMA'd per grid step).
        flops = sum(2 * b_pad * pdims[l] * pdims[l + 1] for l in range(num_layers))
        transcendentals = sum(b_pad * pdims[l + 1] for l in range(num_layers))
        bytes_accessed = (
            x_p.size * x_p.dtype.itemsize
            + weight_bytes
            + b_pad * pdims[-1] * 4
        )

        return pl.pallas_call(
            kernel,
            out_shape=out_shape,
            grid=grid,
            in_specs=in_specs,
            out_specs=out_specs,
            compiler_params=pltpu.CompilerParams(
                dimension_semantics=("parallel",),
                vmem_limit_bytes=vmem_limit,
            ),
            cost_estimate=pl.CostEstimate(
                flops=flops,
                transcendentals=transcendentals,
                bytes_accessed=bytes_accessed,
            ),
        )(*flat_inputs)

    try:
        # Grid-invariant weights/biases: single-buffered (no 2x VMEM residency).
        y_p = _call(pl.Buffered(1))
        jax.block_until_ready(y_p)
    except Exception:
        # TODO(synk): drop this fallback once Buffered(1) support is confirmed
        # on all deployed jax versions.
        y_p = _call(None)

    return y_p[:B, :out_dim]


def init_mlp_params(key, input_dim, output_dim, hidden_dims):
    """Deterministic init mimicking nn.Linear's uniform(-1/sqrt(fan_in), ...).
    Weights are stored pre-transposed as (in_features, out_features)."""
    params = []
    prev = input_dim
    for dim in list(hidden_dims) + [output_dim]:
        key, kw, kb = jax.random.split(key, 3)
        bound = 1.0 / jnp.sqrt(prev)
        w_t = jax.random.uniform(kw, (prev, dim), jnp.float32, -bound, bound)
        b = jax.random.uniform(kb, (dim,), jnp.float32, -bound, bound)
        params.append((w_t, b))
        prev = dim
    return params


if __name__ == "__main__":
    # Small shapes consistent with the module: batch=4, inputDim=16,
    # hiddenDims=(32, 32), outputDim=8.
    input_dim, output_dim, hidden_dims = 16, 8, (32, 32)
    batch = 4

    key = jax.random.PRNGKey(0)
    key, kx = jax.random.split(key)
    x = jax.random.normal(kx, (batch, input_dim), jnp.float32)
    params = init_mlp_params(key, input_dim, output_dim, hidden_dims)

    # One-time parameter preparation (padding + bf16 cast) hoisted out of the
    # per-call hot path.
    prepared = prepare_mlp_params(params)

    y = mlp_forward(x, prepared)
    y = jax.block_until_ready(y)
    assert y.shape == (batch, output_dim)

    # Matched-precision pure-JAX reference: bf16 MXU inputs (and bf16-carried
    # hidden activations, identical to the kernel), f32 accumulation.
    ref = x.astype(jnp.float32)
    for w_t, b in params:
        z = jnp.dot(ref.astype(jnp.bfloat16), w_t.astype(jnp.bfloat16),
                    preferred_element_type=jnp.float32) + b
        ref = jax.nn.sigmoid(z)
    assert jnp.allclose(y, ref, atol=2e-3, rtol=2e-3), \
        float(jnp.max(jnp.abs(y - ref)))

    # Loose check against the full-f32 reference (bf16 matmul rounding only).
    ref32 = x
    for w_t, b in params:
        ref32 = jax.nn.sigmoid(ref32 @ w_t + b)
    assert jnp.allclose(y, ref32, atol=5e-2), \
        float(jnp.max(jnp.abs(y - ref32)))

    print("KERNEL_OK")
</pallas_src>

<mosaic_0001>
module attributes {stable_mosaic.version = 11 : i64} {
  func.func @_fused_mlp_kernel(%arg0: i32, %arg1: memref<8x128xf32, #tpu.memory_space<vmem>>, %arg2: memref<128x128xbf16, #tpu.memory_space<vmem>>, %arg3: memref<1x128xf32, #tpu.memory_space<vmem>>, %arg4: memref<128x128xbf16, #tpu.memory_space<vmem>>, %arg5: memref<1x128xf32, #tpu.memory_space<vmem>>, %arg6: memref<128x128xbf16, #tpu.memory_space<vmem>>, %arg7: memref<1x128xf32, #tpu.memory_space<vmem>>, %arg8: memref<8x128xf32, #tpu.memory_space<vmem>>) attributes {dimension_semantics = [#tpu.dimension_semantics<parallel>], iteration_bounds = array<i64: 1>, scalar_prefetch = 0 : i64, scratch_operands = 0 : i64, tpu.core_type = #tpu.core_type<tc>, window_params = [{transform_indices = @transform_0, window_bounds = array<i64: 8, 128>}, {pipeline_mode = #tpu.pipeline_mode<synchronous>, transform_indices = @transform_1, window_bounds = array<i64: 128, 128>}, {pipeline_mode = #tpu.pipeline_mode<synchronous>, transform_indices = @transform_2, window_bounds = array<i64: 1, 128>}, {pipeline_mode = #tpu.pipeline_mode<synchronous>, transform_indices = @transform_3, window_bounds = array<i64: 128, 128>}, {pipeline_mode = #tpu.pipeline_mode<synchronous>, transform_indices = @transform_4, window_bounds = array<i64: 1, 128>}, {pipeline_mode = #tpu.pipeline_mode<synchronous>, transform_indices = @transform_5, window_bounds = array<i64: 128, 128>}, {pipeline_mode = #tpu.pipeline_mode<synchronous>, transform_indices = @transform_6, window_bounds = array<i64: 1, 128>}, {transform_indices = @transform_7, window_bounds = array<i64: 8, 128>}]} {
    %c0 = arith.constant 0 : index
    %c0_0 = arith.constant 0 : index
    %0 = vector.load %arg1[%c0, %c0_0] : memref<8x128xf32, #tpu.memory_space<vmem>>, vector<8x128xf32>
    %1 = arith.truncf %0 : vector<8x128xf32> to vector<8x128xbf16>
    %c0_1 = arith.constant 0 : index
    %c0_2 = arith.constant 0 : index
    %2 = vector.load %arg2[%c0_1, %c0_2] : memref<128x128xbf16, #tpu.memory_space<vmem>>, vector<128x128xbf16>
    %cst = arith.constant dense<0.000000e+00> : vector<8x128xf32>
    %3 = tpu.matmul %1, %2, %cst {dimension_numbers = #tpu.dot_dimension_numbers<[1], [0], [0], [1], [0, 0, 1, 1], [], []>} : vector<8x128xbf16>, vector<128x128xbf16>, vector<8x128xf32> -> vector<8x128xf32>
    %c0_3 = arith.constant 0 : index
    %c0_4 = arith.constant 0 : index
    %4 = vector.load %arg3[%c0_3, %c0_4] : memref<1x128xf32, #tpu.memory_space<vmem>>, vector<1x128xf32>
    %5 = vector.broadcast %4 : vector<1x128xf32> to vector<8x128xf32>
    %6 = arith.addf %3, %5 : vector<8x128xf32>
    %cst_5 = arith.constant 5.000000e-01 : f32
    %7 = vector.broadcast %cst_5 : f32 to vector<8x128xf32>
    %8 = arith.mulf %7, %6 : vector<8x128xf32>
    %9 = math.tanh %8 : vector<8x128xf32>
    %cst_6 = arith.constant 5.000000e-01 : f32
    %10 = vector.broadcast %cst_6 : f32 to vector<8x128xf32>
    %11 = arith.mulf %10, %9 : vector<8x128xf32>
    %cst_7 = arith.constant 5.000000e-01 : f32
    %12 = vector.broadcast %cst_7 : f32 to vector<8x128xf32>
    %13 = arith.addf %11, %12 : vector<8x128xf32>
    %14 = arith.truncf %13 : vector<8x128xf32> to vector<8x128xbf16>
    %c0_8 = arith.constant 0 : index
    %c0_9 = arith.constant 0 : index
    %15 = vector.load %arg4[%c0_8, %c0_9] : memref<128x128xbf16, #tpu.memory_space<vmem>>, vector<128x128xbf16>
    %cst_10 = arith.constant dense<0.000000e+00> : vector<8x128xf32>
    %16 = tpu.matmul %14, %15, %cst_10 {dimension_numbers = #tpu.dot_dimension_numbers<[1], [0], [0], [1], [0, 0, 1, 1], [], []>} : vector<8x128xbf16>, vector<128x128xbf16>, vector<8x128xf32> -> vector<8x128xf32>
    %c0_11 = arith.constant 0 : index
    %c0_12 = arith.constant 0 : index
    %17 = vector.load %arg5[%c0_11, %c0_12] : memref<1x128xf32, #tpu.memory_space<vmem>>, vector<1x128xf32>
    %18 = vector.broadcast %17 : vector<1x128xf32> to vector<8x128xf32>
    %19 = arith.addf %16, %18 : vector<8x128xf32>
    %cst_13 = arith.constant 5.000000e-01 : f32
    %20 = vector.broadcast %cst_13 : f32 to vector<8x128xf32>
    %21 = arith.mulf %20, %19 : vector<8x128xf32>
    %22 = math.tanh %21 : vector<8x128xf32>
    %cst_14 = arith.constant 5.000000e-01 : f32
    %23 = vector.broadcast %cst_14 : f32 to vector<8x128xf32>
    %24 = arith.mulf %23, %22 : vector<8x128xf32>
    %cst_15 = arith.constant 5.000000e-01 : f32
    %25 = vector.broadcast %cst_15 : f32 to vector<8x128xf32>
    %26 = arith.addf %24, %25 : vector<8x128xf32>
    %27 = arith.truncf %26 : vector<8x128xf32> to vector<8x128xbf16>
    %c0_16 = arith.constant 0 : index
    %c0_17 = arith.constant 0 : index
    %28 = vector.load %arg6[%c0_16, %c0_17] : memref<128x128xbf16, #tpu.memory_space<vmem>>, vector<128x128xbf16>
    %cst_18 = arith.constant dense<0.000000e+00> : vector<8x128xf32>
    %29 = tpu.matmul %27, %28, %cst_18 {dimension_numbers = #tpu.dot_dimension_numbers<[1], [0], [0], [1], [0, 0, 1, 1], [], []>} : vector<8x128xbf16>, vector<128x128xbf16>, vector<8x128xf32> -> vector<8x128xf32>
    %c0_19 = arith.constant 0 : index
    %c0_20 = arith.constant 0 : index
    %30 = vector.load %arg7[%c0_19, %c0_20] : memref<1x128xf32, #tpu.memory_space<vmem>>, vector<1x128xf32>
    %31 = vector.broadcast %30 : vector<1x128xf32> to vector<8x128xf32>
    %32 = arith.addf %29, %31 : vector<8x128xf32>
    %cst_21 = arith.constant 5.000000e-01 : f32
    %33 = vector.broadcast %cst_21 : f32 to vector<8x128xf32>
    %34 = arith.mulf %33, %32 : vector<8x128xf32>
    %35 = math.tanh %34 : vector<8x128xf32>
    %cst_22 = arith.constant 5.000000e-01 : f32
    %36 = vector.broadcast %cst_22 : f32 to vector<8x128xf32>
    %37 = arith.mulf %36, %35 : vector<8x128xf32>
    %cst_23 = arith.constant 5.000000e-01 : f32
    %38 = vector.broadcast %cst_23 : f32 to vector<8x128xf32>
    %39 = arith.addf %37, %38 : vector<8x128xf32>
    %c0_24 = arith.constant 0 : index
    %c0_25 = arith.constant 0 : index
    %40 = vector.load %arg8[%c0_24, %c0_25] : memref<8x128xf32, #tpu.memory_space<vmem>>, vector<8x128xf32>
    tpu.vector_store %arg8[%c0_24, %c0_25], %39 {strides = array<i32>} : memref<8x128xf32, #tpu.memory_space<vmem>>, vector<8x128xf32>,
    return
  }
  func.func @transform_0(%arg0: i32) -> (i32, i32) {
    %c0_i32 = arith.constant 0 : i32
    %c0_i32_0 = arith.constant 0 : i32
    return %arg0, %c0_i32 : i32, i32
  }
  func.func @transform_1(%arg0: i32) -> (i32, i32) {
    %c0_i32 = arith.constant 0 : i32
    %c0_i32_0 = arith.constant 0 : i32
    %c0_i32_1 = arith.constant 0 : i32
    return %c0_i32, %c0_i32_0 : i32, i32
  }
  func.func @transform_2(%arg0: i32) -> (i32, i32) {
    %c0_i32 = arith.constant 0 : i32
    %c0_i32_0 = arith.constant 0 : i32
    %c0_i32_1 = arith.constant 0 : i32
    return %c0_i32, %c0_i32_0 : i32, i32
  }
  func.func @transform_3(%arg0: i32) -> (i32, i32) {
    %c0_i32 = arith.constant 0 : i32
    %c0_i32_0 = arith.constant 0 : i32
    %c0_i32_1 = arith.constant 0 : i32
    return %c0_i32, %c0_i32_0 : i32, i32
  }
  func.func @transform_4(%arg0: i32) -> (i32, i32) {
    %c0_i32 = arith.constant 0 : i32
    %c0_i32_0 = arith.constant 0 : i32
    %c0_i32_1 = arith.constant 0 : i32
    return %c0_i32, %c0_i32_0 : i32, i32
  }
  func.func @transform_5(%arg0: i32) -> (i32, i32) {
    %c0_i32 = arith.constant 0 : i32
    %c0_i32_0 = arith.constant 0 : i32
    %c0_i32_1 = arith.constant 0 : i32
    return %c0_i32, %c0_i32_0 : i32, i32
  }
  func.func @transform_6(%arg0: i32) -> (i32, i32) {
    %c0_i32 = arith.constant 0 : i32
    %c0_i32_0 = arith.constant 0 : i32
    %c0_i32_1 = arith.constant 0 : i32
    return %c0_i32, %c0_i32_0 : i32, i32
  }
  func.func @transform_7(%arg0: i32) -> (i32, i32) {
    %c0_i32 = arith.constant 0 : i32
    %c0_i32_0 = arith.constant 0 : i32
    return %arg0, %c0_i32 : i32, i32
  }
}

module attributes {stable_mosaic.version = 11 : i64} {
  func.func @_fused_mlp_kernel(%arg0: i32, %arg1: memref<8x128xf32, #tpu.memory_space<vmem>>, %arg2: memref<128x128xbf16, #tpu.memory_space<vmem>>, %arg3: memref<1x128xf32, #tpu.memory_space<vmem>>, %arg4: memref<128x128xbf16, #tpu.memory_space<vmem>>, %arg5: memref<1x128xf32, #tpu.memory_space<vmem>>, %arg6: memref<128x128xbf16, #tpu.memory_space<vmem>>, %arg7: memref<1x128xf32, #tpu.memory_space<vmem>>, %arg8: memref<8x128xf32, #tpu.memory_space<vmem>>) attributes {dimension_semantics = [#tpu.dimension_semantics<parallel>], iteration_bounds = array<i64: 1>, scalar_prefetch = 0 : i64, scratch_operands = 0 : i64, tpu.core_type = #tpu.core_type<tc>, window_params = [{transform_indices = @transform_0, window_bounds = array<i64: 8, 128>}, {pipeline_mode = #tpu.pipeline_mode<synchronous>, transform_indices = @transform_1, window_bounds = array<i64: 128, 128>}, {pipeline_mode = #tpu.pipeline_mode<synchronous>, transform_indices = @transform_2, window_bounds = array<i64: 1, 128>}, {pipeline_mode = #tpu.pipeline_mode<synchronous>, transform_indices = @transform_3, window_bounds = array<i64: 128, 128>}, {pipeline_mode = #tpu.pipeline_mode<synchronous>, transform_indices = @transform_4, window_bounds = array<i64: 1, 128>}, {pipeline_mode = #tpu.pipeline_mode<synchronous>, transform_indices = @transform_5, window_bounds = array<i64: 128, 128>}, {pipeline_mode = #tpu.pipeline_mode<synchronous>, transform_indices = @transform_6, window_bounds = array<i64: 1, 128>}, {transform_indices = @transform_7, window_bounds = array<i64: 8, 128>}]} {
    %c0 = arith.constant 0 : index
    %c0_0 = arith.constant 0 : index
    %0 = vector.load %arg1[%c0, %c0_0] : memref<8x128xf32, #tpu.memory_space<vmem>>, vector<8x128xf32>
    %1 = arith.truncf %0 : vector<8x128xf32> to vector<8x128xbf16>
    %c0_1 = arith.constant 0 : index
    %c0_2 = arith.constant 0 : index
    %2 = vector.load %arg2[%c0_1, %c0_2] : memref<128x128xbf16, #tpu.memory_space<vmem>>, vector<128x128xbf16>
    %cst = arith.constant dense<0.000000e+00> : vector<8x128xf32>
    %3 = tpu.matmul %1, %2, %cst {dimension_numbers = #tpu.dot_dimension_numbers<[1], [0], [0], [1], [0, 0, 1, 1], [], []>} : vector<8x128xbf16>, vector<128x128xbf16>, vector<8x128xf32> -> vector<8x128xf32>
    %c0_3 = arith.constant 0 : index
    %c0_4 = arith.constant 0 : index
    %4 = vector.load %arg3[%c0_3, %c0_4] : memref<1x128xf32, #tpu.memory_space<vmem>>, vector<1x128xf32>
    %5 = vector.broadcast %4 : vector<1x128xf32> to vector<8x128xf32>
    %6 = arith.addf %3, %5 : vector<8x128xf32>
    %cst_5 = arith.constant 5.000000e-01 : f32
    %7 = vector.broadcast %cst_5 : f32 to vector<8x128xf32>
    %8 = arith.mulf %7, %6 : vector<8x128xf32>
    %9 = math.tanh %8 : vector<8x128xf32>
    %cst_6 = arith.constant 5.000000e-01 : f32
    %10 = vector.broadcast %cst_6 : f32 to vector<8x128xf32>
    %11 = arith.mulf %10, %9 : vector<8x128xf32>
    %cst_7 = arith.constant 5.000000e-01 : f32
    %12 = vector.broadcast %cst_7 : f32 to vector<8x128xf32>
    %13 = arith.addf %11, %12 : vector<8x128xf32>
    %14 = arith.truncf %13 : vector<8x128xf32> to vector<8x128xbf16>
    %c0_8 = arith.constant 0 : index
    %c0_9 = arith.constant 0 : index
    %15 = vector.load %arg4[%c0_8, %c0_9] : memref<128x128xbf16, #tpu.memory_space<vmem>>, vector<128x128xbf16>
    %cst_10 = arith.constant dense<0.000000e+00> : vector<8x128xf32>
    %16 = tpu.matmul %14, %15, %cst_10 {dimension_numbers = #tpu.dot_dimension_numbers<[1], [0], [0], [1], [0, 0, 1, 1], [], []>} : vector<8x128xbf16>, vector<128x128xbf16>, vector<8x128xf32> -> vector<8x128xf32>
    %c0_11 = arith.constant 0 : index
    %c0_12 = arith.constant 0 : index
    %17 = vector.load %arg5[%c0_11, %c0_12] : memref<1x128xf32, #tpu.memory_space<vmem>>, vector<1x128xf32>
    %18 = vector.broadcast %17 : vector<1x128xf32> to vector<8x128xf32>
    %19 = arith.addf %16, %18 : vector<8x128xf32>
    %cst_13 = arith.constant 5.000000e-01 : f32
    %20 = vector.broadcast %cst_13 : f32 to vector<8x128xf32>
    %21 = arith.mulf %20, %19 : vector<8x128xf32>
    %22 = math.tanh %21 : vector<8x128xf32>
    %cst_14 = arith.constant 5.000000e-01 : f32
    %23 = vector.broadcast %cst_14 : f32 to vector<8x128xf32>
    %24 = arith.mulf %23, %22 : vector<8x128xf32>
    %cst_15 = arith.constant 5.000000e-01 : f32
    %25 = vector.broadcast %cst_15 : f32 to vector<8x128xf32>
    %26 = arith.addf %24, %25 : vector<8x128xf32>
    %27 = arith.truncf %26 : vector<8x128xf32> to vector<8x128xbf16>
    %c0_16 = arith.constant 0 : index
    %c0_17 = arith.constant 0 : index
    %28 = vector.load %arg6[%c0_16, %c0_17] : memref<128x128xbf16, #tpu.memory_space<vmem>>, vector<128x128xbf16>
    %cst_18 = arith.constant dense<0.000000e+00> : vector<8x128xf32>
    %29 = tpu.matmul %27, %28, %cst_18 {dimension_numbers = #tpu.dot_dimension_numbers<[1], [0], [0], [1], [0, 0, 1, 1], [], []>} : vector<8x128xbf16>, vector<128x128xbf16>, vector<8x128xf32> -> vector<8x128xf32>
    %c0_19 = arith.constant 0 : index
    %c0_20 = arith.constant 0 : index
    %30 = vector.load %arg7[%c0_19, %c0_20] : memref<1x128xf32, #tpu.memory_space<vmem>>, vector<1x128xf32>
    %31 = vector.broadcast %30 : vector<1x128xf32> to vector<8x128xf32>
    %32 = arith.addf %29, %31 : vector<8x128xf32>
    %cst_21 = arith.constant 5.000000e-01 : f32
    %33 = vector.broadcast %cst_21 : f32 to vector<8x128xf32>
    %34 = arith.mulf %33, %32 : vector<8x128xf32>
    %35 = math.tanh %34 : vector<8x128xf32>
    %cst_22 = arith.constant 5.000000e-01 : f32
    %36 = vector.broadcast %cst_22 : f32 to vector<8x128xf32>
    %37 = arith.mulf %36, %35 : vector<8x128xf32>
    %cst_23 = arith.constant 5.000000e-01 : f32
    %38 = vector.broadcast %cst_23 : f32 to vector<8x128xf32>
    %39 = arith.addf %37, %38 : vector<8x128xf32>
    %c0_24 = arith.constant 0 : index
    %c0_25 = arith.constant 0 : index
    %40 = vector.load %arg8[%c0_24, %c0_25] : memref<8x128xf32, #tpu.memory_space<vmem>>, vector<8x128xf32>
    tpu.vector_store %arg8[%c0_24, %c0_25], %39 {strides = array<i32>} : memref<8x128xf32, #tpu.memory_space<vmem>>, vector<8x128xf32>,
    return
  }
  func.func @transform_0(%arg0: i32) -> (i32, i32) {
    %c0_i32 = arith.constant 0 : i32
    %c0_i32_0 = arith.constant 0 : i32
    return %arg0, %c0_i32 : i32, i32
  }
  func.func @transform_1(%arg0: i32) -> (i32, i32) {
    %c0_i32 = arith.constant 0 : i32
    %c0_i32_0 = arith.constant 0 : i32
    %c0_i32_1 = arith.constant 0 : i32
    return %c0_i32, %c0_i32_0 : i32, i32
  }
  func.func @transform_2(%arg0: i32) -> (i32, i32) {
    %c0_i32 = arith.constant 0 : i32
    %c0_i32_0 = arith.constant 0 : i32
    %c0_i32_1 = arith.constant 0 : i32
    return %c0_i32, %c0_i32_0 : i32, i32
  }
  func.func @transform_3(%arg0: i32) -> (i32, i32) {
    %c0_i32 = arith.constant 0 : i32
    %c0_i32_0 = arith.constant 0 : i32
    %c0_i32_1 = arith.constant 0 : i32
    return %c0_i32, %c0_i32_0 : i32, i32
  }
  func.func @transform_4(%arg0: i32) -> (i32, i32) {
    %c0_i32 = arith.constant 0 : i32
    %c0_i32_0 = arith.constant 0 : i32
    %c0_i32_1 = arith.constant 0 : i32
    return %c0_i32, %c0_i32_0 : i32, i32
  }
  func.func @transform_5(%arg0: i32) -> (i32, i32) {
    %c0_i32 = arith.constant 0 : i32
    %c0_i32_0 = arith.constant 0 : i32
    %c0_i32_1 = arith.constant 0 : i32
    return %c0_i32, %c0_i32_0 : i32, i32
  }
  func.func @transform_6(%arg0: i32) -> (i32, i32) {
    %c0_i32 = arith.constant 0 : i32
    %c0_i32_0 = arith.constant 0 : i32
    %c0_i32_1 = arith.constant 0 : i32
    return %c0_i32, %c0_i32_0 : i32, i32
  }
  func.func @transform_7(%arg0: i32) -> (i32, i32) {
    %c0_i32 = arith.constant 0 : i32
    %c0_i32_0 = arith.constant 0 : i32
    return %arg0, %c0_i32 : i32, i32
  }
}

</mosaic_0001>

<bundles_post_ra>
// kernel: tpu_custom_call.1
= control target key start
LH: loop header
LB: loop body
LE: loop exit
PB: predicated region body
PF: predicated region fallthrough
CT: control target
= control target key end

     0   :  { %12 = vsyncpa [#allocation3], 0  ;;  %s876_s0 = inlined_call_operand.hbm [shape: f32[8,128], index: 0, kind: input, shape index: {}]   ;;  %s877_s1 = inlined_call_operand.hbm [shape: bf16[128,128], index: 1, kind: input, shape index: {}]   ;;  %s878_s2 = inlined_call_operand.vmem [shape: f32[1,128], index: 2, kind: input, shape index: {}]   ;;  %s879_s3 = inlined_call_operand.hbm [shape: bf16[128,128], index: 3, kind: input, shape index: {}]   ;;  %s880_s4 = inlined_call_operand.vmem [shape: f32[1,128], index: 4, kind: input, shape index: {}]   ;;  %s881_s5 = inlined_call_operand.hbm [shape: bf16[128,128], index: 5, kind: input, shape index: {}]   ;;  %s882_s6 = inlined_call_operand.vmem [shape: f32[1,128], index: 6, kind: input, shape index: {}]   ;;  %s883_s7 = inlined_call_operand.hbm [shape: f32[8,128], index: 7, kind: output, shape index: {}]  }
   0x1   :  { %13 = vsyncpa [#allocation6], 0 }
   0x2   :  { %14 = vsyncpa [#allocation9], 0 }
   0x3   :  { %15 = vsyncpa [#allocation4], 0  ;;  %s719_s24 = smov [#allocation5]   ;;  %s601_s28 = scalar_lea.hbm %s877_s1, 1024 }
   0x4   :  { %s31_s25 = sshll.u32 %s719_s24, 4  ;;  %p602_p0 = scmp.ne.s32.totalorder %s877_s1, %s601_s28  ;;  %s32_s25 = int_to_ptr.vmem [resolvable:$true] %s31_s25 }
   0x5   :  { %p605_p1 = scmp.lt.u32.totalorder %s601_s28, %s877_s1 }
   0x7   :  { %p607_p2 = pnand %p605_p1, %p602_p0 }
   0x9   :  { %610 = shalt.err (!%p607_p2)
}
   0xa   :  { %s611_s10 = scalar_lea.vmem %s32_s25, 1024  ;;  %p616_p4 = scmp.lt.s32.totalorder %s32_s25, %s32_s25 }
   0xb   :  { %p612_p3 = scmp.ne.s32.totalorder %s32_s25, %s611_s10  ;;  %p617_p5 = scmp.lt.s32.totalorder %s611_s10, %s611_s10 }
   0xd   :  { %p618_p6 = por %p617_p5, %p616_p4 }
   0xf   :  { %p619_p7 = pnand %p618_p6, %p612_p3 }
  0x11   :  { %622 = shalt.err (!%p619_p7)
}
  0x12   :  { %s720_s11 = smov 64   ;;  %s721_s12 = smov 4  }
  0x13   :  { %37 = dma.hbm_to_vmem [thread:$0]  %s877_s1, 1024, %s32_s25, [#allocation6], %s720_s11, %s720_s11, %s721_s12  }
  0x14   :  { %s722_s15 = smov [#allocation2]   ;;  %s723_s17 = smov [#allocation7]  }
  0x15   :  { %s22_s16 = sshll.u32 %s722_s15, 4  ;;  %s45_s18 = sshll.u32 %s723_s17, 4  ;;  %s23_s16 = int_to_ptr.vmem [resolvable:$true] %s22_s16  ;;  %s46_s18 = int_to_ptr.vmem [resolvable:$true] %s45_s18 }
  0x16   :  { %s623_s21 = scalar_lea.hbm %s876_s0, 128 }
  0x17   :  { %p624_p8 = scmp.ne.s32.totalorder %s876_s0, %s623_s21  ;;  %p627_p9 = scmp.lt.u32.totalorder %s623_s21, %s876_s0 }
  0x19   :  { %p629_p10 = pnand %p627_p9, %p624_p8 }
  0x1b   :  { %632 = shalt.err (!%p629_p10)
}
  0x1c   :  { %s633_s1 = scalar_lea.vmem %s23_s16, 128  ;;  %p638_p12 = scmp.lt.s32.totalorder %s23_s16, %s23_s16 }
  0x1d   :  { %p634_p11 = scmp.ne.s32.totalorder %s23_s16, %s633_s1  ;;  %p639_p13 = scmp.lt.s32.totalorder %s633_s1, %s633_s1 }
  0x1f   :  { %p640_p0 = por %p639_p13, %p638_p12 }
  0x21   :  { %p641_p1 = pnand %p640_p0, %p634_p11 }
  0x23   :  { %644 = shalt.err (!%p641_p1)
}
  0x24   :  { %25 = dma.hbm_to_vmem [thread:$0]  %s876_s0, 128, %s23_s16, [#allocation3]  }
  0x25   :  { %s645_s30 = scalar_lea.hbm %s879_s3, 1024 }
  0x26   :  { %p646_p2 = scmp.ne.s32.totalorder %s879_s3, %s645_s30  ;;  %p649_p3 = scmp.lt.u32.totalorder %s645_s30, %s879_s3 }
  0x28   :  { %p651_p4 = pnand %p649_p3, %p646_p2 }
  0x2a   :  { %654 = shalt.err (!%p651_p4)
}
  0x2b   :  { %s655_s14 = scalar_lea.vmem %s46_s18, 1024  ;;  %p660_p6 = scmp.lt.s32.totalorder %s46_s18, %s46_s18 }
  0x2c   :  { %p656_p5 = scmp.ne.s32.totalorder %s46_s18, %s655_s14  ;;  %p661_p7 = scmp.lt.s32.totalorder %s655_s14, %s655_s14 }
  0x2e   :  { %p662_p8 = por %p661_p7, %p660_p6 }
  0x30   :  { %p663_p9 = pnand %p662_p8, %p656_p5 }
  0x32   :  { %666 = shalt.err (!%p663_p9)
}
  0x33   :  { %51 = dma.hbm_to_vmem [thread:$0]  %s879_s3, 1024, %s46_s18, [#allocation6], %s720_s11, %s720_s11, %s721_s12  }
  0x34   :  { %s724_s16 = smov [#allocation8]   ;;  %s667_s21 = scalar_lea.hbm %s881_s5, 1024 }
  0x35   :  { %s59_s17 = sshll.u32 %s724_s16, 4  ;;  %p668_p10 = scmp.ne.s32.totalorder %s881_s5, %s667_s21  ;;  %s60_s17 = int_to_ptr.vmem [resolvable:$true] %s59_s17 }
  0x36   :  { %p671_p11 = scmp.lt.u32.totalorder %s667_s21, %s881_s5 }
  0x38   :  { %p673_p12 = pnand %p671_p11, %p668_p10 }
  0x3a   :  { %676 = shalt.err (!%p673_p12)
}
  0x3b   :  { %s677_s1 = scalar_lea.vmem %s60_s17, 1024  ;;  %p682_p0 = scmp.lt.s32.totalorder %s60_s17, %s60_s17 }
  0x3c   :  { %p678_p13 = scmp.ne.s32.totalorder %s60_s17, %s677_s1  ;;  %p683_p1 = scmp.lt.s32.totalorder %s677_s1, %s677_s1 }
  0x3e   :  { %p684_p2 = por %p683_p1, %p682_p0 }
  0x40   :  { %p685_p3 = pnand %p684_p2, %p678_p13 }
  0x42   :  { %688 = shalt.err (!%p685_p3)
}
  0x43   :  { %65 = dma.hbm_to_vmem [thread:$0]  %s881_s5, 1024, %s60_s17, [#allocation9], %s720_s11, %s720_s11, %s721_s12  }
  0x44   :  { %711 = dma.done.wait [#allocation3], 128  }
  0x45   :  { %712 = vsyncadd [#allocation3], 4294967168 }
  0x46   :  { %713 = dma.done.wait [#allocation6], 2048  }
  0x47   :  { %714 = vsyncadd [#allocation6], 4294965248 }
  0x48   :  { %715 = dma.done.wait [#allocation9], 1024  }
  0x49   :  { %716 = vsyncadd [#allocation9], 4294966272  ;;  %v725_v0 = vmov 0.0   ;;  %vm726_vm0 = vmmov 0   ;;  %v571_v1 = vld [vmem:[#allocation5] sm:$0xff]   ;;  %v572_v2 = vld [vmem:[#allocation5 + $0x8] sm:$0xff]  }
  0x4a   :  { %502 = vmatprep.subr.bf16.mxu0 %v725_v0  ;;  %518 = vmatprep.mubr.msk.bf16.mxu0 %vm726_vm0, %v725_v0  ;;  %v573_v3 = vld [vmem:[#allocation5 + $0x10] sm:$0xff]   ;;  %v579_v4 = vld [vmem:[#allocation7] sm:$0xff]   ;;  %v574_v5 = vld [vmem:[#allocation5 + $0x18] sm:$0xff]  }
  0x4b   :  { %522 = vmatprep.subr.bf16.mxu1 %v725_v0  ;;  %538 = vmatprep.mubr.msk.bf16.mxu1 %vm726_vm0, %v725_v0  ;;  %v580_v6 = vld [vmem:[#allocation7 + $0x8] sm:$0xff]   ;;  %v575_v7 = vld [vmem:[#allocation5 + $0x20] sm:$0xff]   ;;  %v581_v8 = vld [vmem:[#allocation7 + $0x10] sm:$0xff]  }
  0x4c   :  { %503 = vmatpush3.bf16.msra.mxu0 %v571_v1  ;;  %523 = vmatpush3.bf16.msra.mxu1 %v579_v4  ;;  %v576_v9 = vld [vmem:[#allocation5 + $0x28] sm:$0xff]   ;;  %v577_v10 = vld [vmem:[#allocation5 + $0x30] sm:$0xff]   ;;  %v578_v11 = vld [vmem:[#allocation5 + $0x38] sm:$0xff]  }
  0x4d   :  { %504 = vmatprep.subr.bf16.mxu0 %v725_v0  ;;  %524 = vmatprep.subr.bf16.mxu1 %v725_v0  ;;  %v81_v12 = vld [vmem:[#allocation2] sm:$0xff]  ;;  %v583_v15 = vld [vmem:[#allocation7 + $0x20] sm:$0xff]   ;;  %v584_v16 = vld [vmem:[#allocation7 + $0x28] sm:$0xff]  }
  0x4e   :  { %v82_v13 = vpack.c.bf16 %v81_v12, %v81_v12  ;;  %v582_v14 = vld [vmem:[#allocation7 + $0x18] sm:$0xff]   ;;  %v585_v17 = vld [vmem:[#allocation7 + $0x30] sm:$0xff]   ;;  %v587_v19 = vld [vmem:[#allocation8] sm:$0xff]  }
  0x4f   :  { %v586_v18 = vld [vmem:[#allocation7 + $0x38] sm:$0xff]   ;;  %v588_v20 = vld [vmem:[#allocation8 + $0x8] sm:$0xff]   ;;  %v589_v21 = vld [vmem:[#allocation8 + $0x10] sm:$0xff]  }
  0x50   :  { %505 = vmatpush3.bf16.msra.mxu0 %v572_v2  ;;  %525 = vmatpush3.bf16.msra.mxu1 %v580_v6  ;;  %v448_v22 = vld [vmem:[%s878_s2] ss:$0 sm:$0xff]  ;;  %v591_v34 = vld [vmem:[#allocation8 + $0x20] sm:$0xff]   ;;  %v592_v35 = vld [vmem:[#allocation8 + $0x28] sm:$0xff]  }
  0x51   :  { %506 = vmatprep.subr.bf16.mxu0 %v725_v0  ;;  %526 = vmatprep.subr.bf16.mxu1 %v725_v0  ;;  %v590_v33 = vld [vmem:[#allocation8 + $0x18] sm:$0xff]   ;;  %v593_v36 = vld [vmem:[#allocation8 + $0x30] sm:$0xff]  }
  0x52   :  { %v594_v37 = vld [vmem:[#allocation8 + $0x38] sm:$0xff]  }
  0x53   :  { %v457_v38 = vld [vmem:[%s880_s4] ss:$0 sm:$0xff]  ;;  %s727_s4 = smov [#allocation10]  }
  0x54   :  { %507 = vmatpush3.bf16.msra.mxu0 %v573_v3  ;;  %527 = vmatpush3.bf16.msra.mxu1 %v581_v8  ;;  %v466_v49 = vld [vmem:[%s882_s6] ss:$0 sm:$0xff]  ;;  %s437_s28 = sshll.u32 %s727_s4, 4  ;;  %s438_s28 = int_to_ptr.vmem [resolvable:$true] %s437_s28 }
  0x55   :  { %508 = vmatprep.subr.bf16.mxu0 %v725_v0  ;;  %528 = vmatprep.subr.bf16.mxu1 %v725_v0  ;;  %s689_s29 = scalar_lea.vmem %s438_s28, 128  ;;  %p694_p5 = scmp.lt.s32.totalorder %s438_s28, %s438_s28 }
  0x56   :  { %p690_p4 = scmp.ne.s32.totalorder %s438_s28, %s689_s29  ;;  %p695_p6 = scmp.lt.s32.totalorder %s689_s29, %s689_s29 }
  0x58   :  { %509 = vmatpush3.bf16.msra.mxu0 %v574_v5  ;;  %529 = vmatpush3.bf16.msra.mxu1 %v582_v14  ;;  %p696_p7 = por %p695_p6, %p694_p5 }
  0x59   :  { %510 = vmatprep.subr.bf16.mxu0 %v725_v0  ;;  %530 = vmatprep.subr.bf16.mxu1 %v725_v0 }
  0x5a   :  { %p697_p8 = pnand %p696_p7, %p690_p4 }
  0x5c   :  { %511 = vmatpush3.bf16.msra.mxu0 %v575_v7  ;;  %531 = vmatpush3.bf16.msra.mxu1 %v583_v15 }
  0x5d   :  { %512 = vmatprep.subr.bf16.mxu0 %v725_v0  ;;  %532 = vmatprep.subr.bf16.mxu1 %v725_v0 }
  0x60   :  { %513 = vmatpush3.bf16.msra.mxu0 %v576_v9  ;;  %533 = vmatpush3.bf16.msra.mxu1 %v584_v16 }
  0x61   :  { %514 = vmatprep.subr.bf16.mxu0 %v725_v0  ;;  %534 = vmatprep.subr.bf16.mxu1 %v725_v0 }
  0x64   :  { %515 = vmatpush3.bf16.msra.mxu0 %v577_v10  ;;  %535 = vmatpush3.bf16.msra.mxu1 %v585_v17 }
  0x65   :  { %516 = vmatprep.subr.bf16.mxu0 %v725_v0  ;;  %536 = vmatprep.subr.bf16.mxu1 %v725_v0 }
  0x68   :  { %517 = vmatpush3.bf16.msra.mxu0 %v578_v11  ;;  %537 = vmatpush3.bf16.msra.mxu1 %v586_v18 }
  0x69   :  { %542 = vmatprep.subr.bf16.mxu0 %v725_v0 }
  0x6b   :  { %519 = vmatmul.mubr.bf16.vlgmr.msra.gmra.mrb[0].mxu0 %v82_v13 }
  0x6c   :  { %558 = vmatprep.mubr.msk.bf16.mxu0 %vm726_vm0, %v725_v0  ;;  %543 = vmatpush3.bf16.msra.mxu0 %v587_v19 }
  0x6d   :  { %544 = vmatprep.subr.bf16.mxu0 %v725_v0 }
  0x70   :  { %545 = vmatpush3.bf16.msra.mxu0 %v588_v20 }
  0x71   :  { %546 = vmatprep.subr.bf16.mxu0 %v725_v0 }
  0x74   :  { %547 = vmatpush3.bf16.msra.mxu0 %v589_v21 }
  0x75   :  { %548 = vmatprep.subr.bf16.mxu0 %v725_v0 }
  0x78   :  { %549 = vmatpush3.bf16.msra.mxu0 %v590_v33 }
  0x79   :  { %550 = vmatprep.subr.bf16.mxu0 %v725_v0 }
  0x7c   :  { %551 = vmatpush3.bf16.msra.mxu0 %v591_v34 }
  0x7d   :  { %552 = vmatprep.subr.bf16.mxu0 %v725_v0 }
  0x80   :  { %553 = vmatpush3.bf16.msra.mxu0 %v592_v35 }
  0x81   :  { %554 = vmatprep.subr.bf16.mxu0 %v725_v0 }
  0x84   :  { %555 = vmatpush3.bf16.msra.mxu0 %v593_v36 }
  0x85   :  { %556 = vmatprep.subr.bf16.mxu0 %v725_v0 }
  0x88   :  { %557 = vmatpush3.bf16.msra.mxu0 %v594_v37 }
 0x13e   :  { %v188_v23 = vpop.f32.mrb[0].mxu0 }
 0x13f   :  { %v189_v24 = vadd.f32 %v448_v22, %v188_v23  ;;  %v520_v25 = vpop.f32.mrb[1].mxu0 }
 0x140   :  { %v191_v26 = vpop.f32.mrb[2].mxu0 }
 0x141   :  { %v194_v27 = vmul.f32 0.5, %v189_v24  ;;  %v521_v28 = vpop.f32.mrb[3].mxu0 }
 0x143   :  { %595 = vtanh.f32 %v194_v27 }
 0x14d   :  { %v596_v29 = vpop.eup %595 }
 0x14e   :  { %v196_v30 = vmul.f32 0.5, %v596_v29 }
 0x150   :  { %v197_v31 = vadd.f32 0.5, %v196_v30 }
 0x152   :  { %v198_v32 = vpack.c.bf16 %v197_v31, %v197_v31 }
 0x154   :  { %539 = vmatmul.mubr.bf16.vlgmr.msra.gmra.mrb[0].mxu1 %v198_v32 }
 0x227   :  { %v304_v39 = vpop.f32.mrb[0].mxu1 }
 0x228   :  { %v305_v40 = vadd.f32 %v457_v38, %v304_v39  ;;  %v540_v41 = vpop.f32.mrb[1].mxu1 }
 0x229   :  { %v307_v42 = vpop.f32.mrb[2].mxu1 }
 0x22a   :  { %v310_v43 = vmul.f32 0.5, %v305_v40  ;;  %v541_v44 = vpop.f32.mrb[3].mxu1 }
 0x22c   :  { %597 = vtanh.f32 %v310_v43 }
 0x236   :  { %v598_v45 = vpop.eup %597 }
 0x237   :  { %v312_v46 = vmul.f32 0.5, %v598_v45 }
 0x239   :  { %v313_v47 = vadd.f32 0.5, %v312_v46 }
 0x23b   :  { %v314_v48 = vpack.c.bf16 %v313_v47, %v313_v47 }
 0x23d   :  { %559 = vmatmul.mubr.bf16.vlgmr.msra.gmra.mrb[4].mxu0 %v314_v48 }
 0x310   :  { %v420_v50 = vpop.f32.mrb[4].mxu0 }
 0x311   :  { %v421_v51 = vadd.f32 %v466_v49, %v420_v50  ;;  %v560_v52 = vpop.f32.mrb[5].mxu0 }
 0x312   :  { %v423_v53 = vpop.f32.mrb[6].mxu0 }
 0x313   :  { %v426_v54 = vmul.f32 0.5, %v421_v51  ;;  %v561_v55 = vpop.f32.mrb[7].mxu0 }
 0x315   :  { %599 = vtanh.f32 %v426_v54 }
 0x31f   :  { %v600_v56 = vpop.eup %599 }
 0x320   :  { %v428_v57 = vmul.f32 0.5, %v600_v56 }
 0x322   :  { %v429_v58 = vadd.f32 0.5, %v428_v57 }
 0x324   :  { %430 = vst [vmem:[#allocation10] sm:$0xff] %v429_v58 }
 0x325   :  { %700 = shalt.err (!%p697_p8)
}
 0x326   :  { %s701_s8 = scalar_lea.hbm %s883_s7, 128 }
 0x327   :  { %p702_p9 = scmp.ne.s32.totalorder %s883_s7, %s701_s8  ;;  %p705_p10 = scmp.lt.u32.totalorder %s701_s8, %s883_s7 }
 0x329   :  { %p707_p11 = pnand %p705_p10, %p702_p9 }
 0x32b   :  { %710 = shalt.err (!%p707_p11)
}
 0x32c   :  { %440 = dma.vmem_to_hbm [thread:$0]  %s438_s28, 128, %s883_s7, [#allocation4]  }
 0x32d   :  { %717 = dma.done.wait [#allocation4], 128  }
 0x32e   :  { %718 = vsyncadd [#allocation4], 4294967168 }
 0x32f   :  { %444 = vsyncpa [#allocation3], 1 }
 0x330   :  { %445 = vsyncpa [#allocation6], 1 }
 0x331   :  { %446 = vsyncpa [#allocation9], 1 }
 0x332   :  { %447 = vsyncpa [#allocation4], 1 }

// kernel: tpu_custom_call.1
= control target key start
LH: loop header
LB: loop body
LE: loop exit
PB: predicated region body
PF: predicated region fallthrough
CT: control target
= control target key end

     0   :  { %12 = vsyncpa [#allocation3], 0  ;;  %s876_s0 = inlined_call_operand.hbm [shape: f32[8,128], index: 0, kind: input, shape index: {}]   ;;  %s877_s1 = inlined_call_operand.hbm [shape: bf16[128,128], index: 1, kind: input, shape index: {}]   ;;  %s878_s2 = inlined_call_operand.vmem [shape: f32[1,128], index: 2, kind: input, shape index: {}]   ;;  %s879_s3 = inlined_call_operand.hbm [shape: bf16[128,128], index: 3, kind: input, shape index: {}]   ;;  %s880_s4 = inlined_call_operand.vmem [shape: f32[1,128], index: 4, kind: input, shape index: {}]   ;;  %s881_s5 = inlined_call_operand.hbm [shape: bf16[128,128], index: 5, kind: input, shape index: {}]   ;;  %s882_s6 = inlined_call_operand.vmem [shape: f32[1,128], index: 6, kind: input, shape index: {}]   ;;  %s883_s7 = inlined_call_operand.hbm [shape: f32[8,128], index: 7, kind: output, shape index: {}]  }
   0x1   :  { %13 = vsyncpa [#allocation6], 0 }
   0x2   :  { %14 = vsyncpa [#allocation9], 0 }
   0x3   :  { %15 = vsyncpa [#allocation4], 0  ;;  %s719_s24 = smov [#allocation5]   ;;  %s601_s28 = scalar_lea.hbm %s877_s1, 1024 }
   0x4   :  { %s31_s25 = sshll.u32 %s719_s24, 4  ;;  %p602_p0 = scmp.ne.s32.totalorder %s877_s1, %s601_s28  ;;  %s32_s25 = int_to_ptr.vmem [resolvable:$true] %s31_s25 }
   0x5   :  { %p605_p1 = scmp.lt.u32.totalorder %s601_s28, %s877_s1 }
   0x7   :  { %p607_p2 = pnand %p605_p1, %p602_p0 }
   0x9   :  { %610 = shalt.err (!%p607_p2)
}
   0xa   :  { %s611_s10 = scalar_lea.vmem %s32_s25, 1024  ;;  %p616_p4 = scmp.lt.s32.totalorder %s32_s25, %s32_s25 }
   0xb   :  { %p612_p3 = scmp.ne.s32.totalorder %s32_s25, %s611_s10  ;;  %p617_p5 = scmp.lt.s32.totalorder %s611_s10, %s611_s10 }
   0xd   :  { %p618_p6 = por %p617_p5, %p616_p4 }
   0xf   :  { %p619_p7 = pnand %p618_p6, %p612_p3 }
  0x11   :  { %622 = shalt.err (!%p619_p7)
}
  0x12   :  { %s720_s11 = smov 64   ;;  %s721_s12 = smov 4  }
  0x13   :  { %37 = dma.hbm_to_vmem [thread:$0]  %s877_s1, 1024, %s32_s25, [#allocation6], %s720_s11, %s720_s11, %s721_s12  }
  0x14   :  { %s722_s15 = smov [#allocation2]   ;;  %s723_s17 = smov [#allocation7]  }
  0x15   :  { %s22_s16 = sshll.u32 %s722_s15, 4  ;;  %s45_s18 = sshll.u32 %s723_s17, 4  ;;  %s23_s16 = int_to_ptr.vmem [resolvable:$true] %s22_s16  ;;  %s46_s18 = int_to_ptr.vmem [resolvable:$true] %s45_s18 }
  0x16   :  { %s623_s21 = scalar_lea.hbm %s876_s0, 128 }
  0x17   :  { %p624_p8 = scmp.ne.s32.totalorder %s876_s0, %s623_s21  ;;  %p627_p9 = scmp.lt.u32.totalorder %s623_s21, %s876_s0 }
  0x19   :  { %p629_p10 = pnand %p627_p9, %p624_p8 }
  0x1b   :  { %632 = shalt.err (!%p629_p10)
}
  0x1c   :  { %s633_s1 = scalar_lea.vmem %s23_s16, 128  ;;  %p638_p12 = scmp.lt.s32.totalorder %s23_s16, %s23_s16 }
  0x1d   :  { %p634_p11 = scmp.ne.s32.totalorder %s23_s16, %s633_s1  ;;  %p639_p13 = scmp.lt.s32.totalorder %s633_s1, %s633_s1 }
  0x1f   :  { %p640_p0 = por %p639_p13, %p638_p12 }
  0x21   :  { %p641_p1 = pnand %p640_p0, %p634_p11 }
  0x23   :  { %644 = shalt.err (!%p641_p1)
}
  0x24   :  { %25 = dma.hbm_to_vmem [thread:$0]  %s876_s0, 128, %s23_s16, [#allocation3]  }
  0x25   :  { %s645_s30 = scalar_lea.hbm %s879_s3, 1024 }
  0x26   :  { %p646_p2 = scmp.ne.s32.totalorder %s879_s3, %s645_s30  ;;  %p649_p3 = scmp.lt.u32.totalorder %s645_s30, %s879_s3 }
  0x28   :  { %p651_p4 = pnand %p649_p3, %p646_p2 }
  0x2a   :  { %654 = shalt.err (!%p651_p4)
}
  0x2b   :  { %s655_s14 = scalar_lea.vmem %s46_s18, 1024  ;;  %p660_p6 = scmp.lt.s32.totalorder %s46_s18, %s46_s18 }
  0x2c   :  { %p656_p5 = scmp.ne.s32.totalorder %s46_s18, %s655_s14  ;;  %p661_p7 = scmp.lt.s32.totalorder %s655_s14, %s655_s14 }
  0x2e   :  { %p662_p8 = por %p661_p7, %p660_p6 }
  0x30   :  { %p663_p9 = pnand %p662_p8, %p656_p5 }
  0x32   :  { %666 = shalt.err (!%p663_p9)
}
  0x33   :  { %51 = dma.hbm_to_vmem [thread:$0]  %s879_s3, 1024, %s46_s18, [#allocation6], %s720_s11, %s720_s11, %s721_s12  }
  0x34   :  { %s724_s16 = smov [#allocation8]   ;;  %s667_s21 = scalar_lea.hbm %s881_s5, 1024 }
  0x35   :  { %s59_s17 = sshll.u32 %s724_s16, 4  ;;  %p668_p10 = scmp.ne.s32.totalorder %s881_s5, %s667_s21  ;;  %s60_s17 = int_to_ptr.vmem [resolvable:$true] %s59_s17 }
  0x36   :  { %p671_p11 = scmp.lt.u32.totalorder %s667_s21, %s881_s5 }
  0x38   :  { %p673_p12 = pnand %p671_p11, %p668_p10 }
  0x3a   :  { %676 = shalt.err (!%p673_p12)
}
  0x3b   :  { %s677_s1 = scalar_lea.vmem %s60_s17, 1024  ;;  %p682_p0 = scmp.lt.s32.totalorder %s60_s17, %s60_s17 }
  0x3c   :  { %p678_p13 = scmp.ne.s32.totalorder %s60_s17, %s677_s1  ;;  %p683_p1 = scmp.lt.s32.totalorder %s677_s1, %s677_s1 }
  0x3e   :  { %p684_p2 = por %p683_p1, %p682_p0 }
  0x40   :  { %p685_p3 = pnand %p684_p2, %p678_p13 }
  0x42   :  { %688 = shalt.err (!%p685_p3)
}
  0x43   :  { %65 = dma.hbm_to_vmem [thread:$0]  %s881_s5, 1024, %s60_s17, [#allocation9], %s720_s11, %s720_s11, %s721_s12  }
  0x44   :  { %711 = dma.done.wait [#allocation3], 128  }
  0x45   :  { %712 = vsyncadd [#allocation3], 4294967168 }
  0x46   :  { %713 = dma.done.wait [#allocation6], 2048  }
  0x47   :  { %714 = vsyncadd [#allocation6], 4294965248 }
  0x48   :  { %715 = dma.done.wait [#allocation9], 1024  }
  0x49   :  { %716 = vsyncadd [#allocation9], 4294966272  ;;  %v725_v0 = vmov 0.0   ;;  %vm726_vm0 = vmmov 0   ;;  %v571_v1 = vld [vmem:[#allocation5] sm:$0xff]   ;;  %v572_v2 = vld [vmem:[#allocation5 + $0x8] sm:$0xff]  }
  0x4a   :  { %502 = vmatprep.subr.bf16.mxu0 %v725_v0  ;;  %518 = vmatprep.mubr.msk.bf16.mxu0 %vm726_vm0, %v725_v0  ;;  %v573_v3 = vld [vmem:[#allocation5 + $0x10] sm:$0xff]   ;;  %v579_v4 = vld [vmem:[#allocation7] sm:$0xff]   ;;  %v574_v5 = vld [vmem:[#allocation5 + $0x18] sm:$0xff]  }
  0x4b   :  { %522 = vmatprep.subr.bf16.mxu1 %v725_v0  ;;  %538 = vmatprep.mubr.msk.bf16.mxu1 %vm726_vm0, %v725_v0  ;;  %v580_v6 = vld [vmem:[#allocation7 + $0x8] sm:$0xff]   ;;  %v575_v7 = vld [vmem:[#allocation5 + $0x20] sm:$0xff]   ;;  %v581_v8 = vld [vmem:[#allocation7 + $0x10] sm:$0xff]  }
  0x4c   :  { %503 = vmatpush3.bf16.msra.mxu0 %v571_v1  ;;  %523 = vmatpush3.bf16.msra.mxu1 %v579_v4  ;;  %v576_v9 = vld [vmem:[#allocation5 + $0x28] sm:$0xff]   ;;  %v577_v10 = vld [vmem:[#allocation5 + $0x30] sm:$0xff]   ;;  %v578_v11 = vld [vmem:[#allocation5 + $0x38] sm:$0xff]  }
  0x4d   :  { %504 = vmatprep.subr.bf16.mxu0 %v725_v0  ;;  %524 = vmatprep.subr.bf16.mxu1 %v725_v0  ;;  %v81_v12 = vld [vmem:[#allocation2] sm:$0xff]  ;;  %v583_v15 = vld [vmem:[#allocation7 + $0x20] sm:$0xff]   ;;  %v584_v16 = vld [vmem:[#allocation7 + $0x28] sm:$0xff]  }
  0x4e   :  { %v82_v13 = vpack.c.bf16 %v81_v12, %v81_v12  ;;  %v582_v14 = vld [vmem:[#allocation7 + $0x18] sm:$0xff]   ;;  %v585_v17 = vld [vmem:[#allocation7 + $0x30] sm:$0xff]   ;;  %v587_v19 = vld [vmem:[#allocation8] sm:$0xff]  }
  0x4f   :  { %v586_v18 = vld [vmem:[#allocation7 + $0x38] sm:$0xff]   ;;  %v588_v20 = vld [vmem:[#allocation8 + $0x8] sm:$0xff]   ;;  %v589_v21 = vld [vmem:[#allocation8 + $0x10] sm:$0xff]  }
  0x50   :  { %505 = vmatpush3.bf16.msra.mxu0 %v572_v2  ;;  %525 = vmatpush3.bf16.msra.mxu1 %v580_v6  ;;  %v448_v22 = vld [vmem:[%s878_s2] ss:$0 sm:$0xff]  ;;  %v591_v34 = vld [vmem:[#allocation8 + $0x20] sm:$0xff]   ;;  %v592_v35 = vld [vmem:[#allocation8 + $0x28] sm:$0xff]  }
  0x51   :  { %506 = vmatprep.subr.bf16.mxu0 %v725_v0  ;;  %526 = vmatprep.subr.bf16.mxu1 %v725_v0  ;;  %v590_v33 = vld [vmem:[#allocation8 + $0x18] sm:$0xff]   ;;  %v593_v36 = vld [vmem:[#allocation8 + $0x30] sm:$0xff]  }
  0x52   :  { %v594_v37 = vld [vmem:[#allocation8 + $0x38] sm:$0xff]  }
  0x53   :  { %v457_v38 = vld [vmem:[%s880_s4] ss:$0 sm:$0xff]  ;;  %s727_s4 = smov [#allocation10]  }
  0x54   :  { %507 = vmatpush3.bf16.msra.mxu0 %v573_v3  ;;  %527 = vmatpush3.bf16.msra.mxu1 %v581_v8  ;;  %v466_v49 = vld [vmem:[%s882_s6] ss:$0 sm:$0xff]  ;;  %s437_s28 = sshll.u32 %s727_s4, 4  ;;  %s438_s28 = int_to_ptr.vmem [resolvable:$true] %s437_s28 }
  0x55   :  { %508 = vmatprep.subr.bf16.mxu0 %v725_v0  ;;  %528 = vmatprep.subr.bf16.mxu1 %v725_v0  ;;  %s689_s29 = scalar_lea.vmem %s438_s28, 128  ;;  %p694_p5 = scmp.lt.s32.totalorder %s438_s28, %s438_s28 }
  0x56   :  { %p690_p4 = scmp.ne.s32.totalorder %s438_s28, %s689_s29  ;;  %p695_p6 = scmp.lt.s32.totalorder %s689_s29, %s689_s29 }
  0x58   :  { %509 = vmatpush3.bf16.msra.mxu0 %v574_v5  ;;  %529 = vmatpush3.bf16.msra.mxu1 %v582_v14  ;;  %p696_p7 = por %p695_p6, %p694_p5 }
  0x59   :  { %510 = vmatprep.subr.bf16.mxu0 %v725_v0  ;;  %530 = vmatprep.subr.bf16.mxu1 %v725_v0 }
  0x5a   :  { %p697_p8 = pnand %p696_p7, %p690_p4 }
  0x5c   :  { %511 = vmatpush3.bf16.msra.mxu0 %v575_v7  ;;  %531 = vmatpush3.bf16.msra.mxu1 %v583_v15 }
  0x5d   :  { %512 = vmatprep.subr.bf16.mxu0 %v725_v0  ;;  %532 = vmatprep.subr.bf16.mxu1 %v725_v0 }
  0x60   :  { %513 = vmatpush3.bf16.msra.mxu0 %v576_v9  ;;  %533 = vmatpush3.bf16.msra.mxu1 %v584_v16 }
  0x61   :  { %514 = vmatprep.subr.bf16.mxu0 %v725_v0  ;;  %534 = vmatprep.subr.bf16.mxu1 %v725_v0 }
  0x64   :  { %515 = vmatpush3.bf16.msra.mxu0 %v577_v10  ;;  %535 = vmatpush3.bf16.msra.mxu1 %v585_v17 }
  0x65   :  { %516 = vmatprep.subr.bf16.mxu0 %v725_v0  ;;  %536 = vmatprep.subr.bf16.mxu1 %v725_v0 }
  0x68   :  { %517 = vmatpush3.bf16.msra.mxu0 %v578_v11  ;;  %537 = vmatpush3.bf16.msra.mxu1 %v586_v18 }
  0x69   :  { %542 = vmatprep.subr.bf16.mxu0 %v725_v0 }
  0x6b   :  { %519 = vmatmul.mubr.bf16.vlgmr.msra.gmra.mrb[0].mxu0 %v82_v13 }
  0x6c   :  { %558 = vmatprep.mubr.msk.bf16.mxu0 %vm726_vm0, %v725_v0  ;;  %543 = vmatpush3.bf16.msra.mxu0 %v587_v19 }
  0x6d   :  { %544 = vmatprep.subr.bf16.mxu0 %v725_v0 }
  0x70   :  { %545 = vmatpush3.bf16.msra.mxu0 %v588_v20 }
  0x71   :  { %546 = vmatprep.subr.bf16.mxu0 %v725_v0 }
  0x74   :  { %547 = vmatpush3.bf16.msra.mxu0 %v589_v21 }
  0x75   :  { %548 = vmatprep.subr.bf16.mxu0 %v725_v0 }
  0x78   :  { %549 = vmatpush3.bf16.msra.mxu0 %v590_v33 }
  0x79   :  { %550 = vmatprep.subr.bf16.mxu0 %v725_v0 }
  0x7c   :  { %551 = vmatpush3.bf16.msra.mxu0 %v591_v34 }
  0x7d   :  { %552 = vmatprep.subr.bf16.mxu0 %v725_v0 }
  0x80   :  { %553 = vmatpush3.bf16.msra.mxu0 %v592_v35 }
  0x81   :  { %554 = vmatprep.subr.bf16.mxu0 %v725_v0 }
  0x84   :  { %555 = vmatpush3.bf16.msra.mxu0 %v593_v36 }
  0x85   :  { %556 = vmatprep.subr.bf16.mxu0 %v725_v0 }
  0x88   :  { %557 = vmatpush3.bf16.msra.mxu0 %v594_v37 }
 0x13e   :  { %v188_v23 = vpop.f32.mrb[0].mxu0 }
 0x13f   :  { %v189_v24 = vadd.f32 %v448_v22, %v188_v23  ;;  %v520_v25 = vpop.f32.mrb[1].mxu0 }
 0x140   :  { %v191_v26 = vpop.f32.mrb[2].mxu0 }
 0x141   :  { %v194_v27 = vmul.f32 0.5, %v189_v24  ;;  %v521_v28 = vpop.f32.mrb[3].mxu0 }
 0x143   :  { %595 = vtanh.f32 %v194_v27 }
 0x14d   :  { %v596_v29 = vpop.eup %595 }
 0x14e   :  { %v196_v30 = vmul.f32 0.5, %v596_v29 }
 0x150   :  { %v197_v31 = vadd.f32 0.5, %v196_v30 }
 0x152   :  { %v198_v32 = vpack.c.bf16 %v197_v31, %v197_v31 }
 0x154   :  { %539 = vmatmul.mubr.bf16.vlgmr.msra.gmra.mrb[0].mxu1 %v198_v32 }
 0x227   :  { %v304_v39 = vpop.f32.mrb[0].mxu1 }
 0x228   :  { %v305_v40 = vadd.f32 %v457_v38, %v304_v39  ;;  %v540_v41 = vpop.f32.mrb[1].mxu1 }
 0x229   :  { %v307_v42 = vpop.f32.mrb[2].mxu1 }
 0x22a   :  { %v310_v43 = vmul.f32 0.5, %v305_v40  ;;  %v541_v44 = vpop.f32.mrb[3].mxu1 }
 0x22c   :  { %597 = vtanh.f32 %v310_v43 }
 0x236   :  { %v598_v45 = vpop.eup %597 }
 0x237   :  { %v312_v46 = vmul.f32 0.5, %v598_v45 }
 0x239   :  { %v313_v47 = vadd.f32 0.5, %v312_v46 }
 0x23b   :  { %v314_v48 = vpack.c.bf16 %v313_v47, %v313_v47 }
 0x23d   :  { %559 = vmatmul.mubr.bf16.vlgmr.msra.gmra.mrb[4].mxu0 %v314_v48 }
 0x310   :  { %v420_v50 = vpop.f32.mrb[4].mxu0 }
 0x311   :  { %v421_v51 = vadd.f32 %v466_v49, %v420_v50  ;;  %v560_v52 = vpop.f32.mrb[5].mxu0 }
 0x312   :  { %v423_v53 = vpop.f32.mrb[6].mxu0 }
 0x313   :  { %v426_v54 = vmul.f32 0.5, %v421_v51  ;;  %v561_v55 = vpop.f32.mrb[7].mxu0 }
 0x315   :  { %599 = vtanh.f32 %v426_v54 }
 0x31f   :  { %v600_v56 = vpop.eup %599 }
 0x320   :  { %v428_v57 = vmul.f32 0.5, %v600_v56 }
 0x322   :  { %v429_v58 = vadd.f32 0.5, %v428_v57 }
 0x324   :  { %430 = vst [vmem:[#allocation10] sm:$0xff] %v429_v58 }
 0x325   :  { %700 = shalt.err (!%p697_p8)
}
 0x326   :  { %s701_s8 = scalar_lea.hbm %s883_s7, 128 }
 0x327   :  { %p702_p9 = scmp.ne.s32.totalorder %s883_s7, %s701_s8  ;;  %p705_p10 = scmp.lt.u32.totalorder %s701_s8, %s883_s7 }
 0x329   :  { %p707_p11 = pnand %p705_p10, %p702_p9 }
 0x32b   :  { %710 = shalt.err (!%p707_p11)
}
 0x32c   :  { %440 = dma.vmem_to_hbm [thread:$0]  %s438_s28, 128, %s883_s7, [#allocation4]  }
 0x32d   :  { %717 = dma.done.wait [#allocation4], 128  }
 0x32e   :  { %718 = vsyncadd [#allocation4], 4294967168 }
 0x32f   :  { %444 = vsyncpa [#allocation3], 1 }
 0x330   :  { %445 = vsyncpa [#allocation6], 1 }
 0x331   :  { %446 = vsyncpa [#allocation9], 1 }
 0x332   :  { %447 = vsyncpa [#allocation4], 1 }

</bundles_post_ra>
